<compile_context>
chip_gen: v6e
topology: v6e:2x2x1
jax: 0.10.0
libtpu: 0.0.40
codegen_flags: <defaults>
</compile_context>

<pallas_src>
import functools

import jax
import jax.numpy as jnp
from jax.experimental import pallas as pl
from jax.experimental.pallas import tpu as pltpu


def _pool_matrix(l_out: int, l_in: int, k: int, s: int, p: int) -> jnp.ndarray:
    """(l_out, l_in) 0/1 matrix: row o marks input positions inside output
    window o, i.e. [s*o - p, s*o - p + k) clipped to [0, l_in)."""
    j = jnp.arange(l_in)[None, :]
    start = s * jnp.arange(l_out)[:, None] - p
    return ((j >= start) & (j < start + k)).astype(jnp.float32)


def _avgpool3d_kernel(x_ref, phwt_ref, o_ref, *, d_windows, ohw, inv_div):
    # x_ref   : (NC_TILE, D, H*W)    input slab for this grid step
    # phwt_ref: (H*W, Ho*Wo)         fused H/W pooling matrix (transposed, 0/1)
    # o_ref   : (NC_TILE, Do*Ho*Wo)  lane-dense output slab
    nc_t, d, hw = x_ref.shape
    x2 = x_ref[...].astype(jnp.float32).reshape(nc_t * d, hw)

    # One batched MXU contraction over the fused (H, W) window axis.
    a = jnp.dot(x2, phwt_ref[...], preferred_element_type=jnp.float32)
    a = (a * jnp.float32(inv_div)).reshape(nc_t, d, ohw)

    # Depth window sums: <= (k-1) VPU adds per output depth, boundary windows
    # are clipped statically (divisor stays k**3 == count_include_pad=True).
    # Each iteration ends with a store, so vreg live ranges stay bounded.
    for od, dds in enumerate(d_windows):
        acc = a[:, dds[0], :]
        for dd in dds[1:]:
            acc = acc + a[:, dd, :]
        o_ref[:, od * ohw:(od + 1) * ohw] = acc.astype(o_ref.dtype)


def avg_pool3d_pallas(x: jnp.ndarray, kernel_size: int, stride: int, padding: int) -> jnp.ndarray:
    """Equivalent of torch.nn.functional.avg_pool3d(x, kernel_size, stride, padding)."""
    n, c, d, h, w = x.shape
    k, s, p = kernel_size, stride, padding
    d_out = (d + 2 * p - k) // s + 1
    h_out = (h + 2 * p - k) // s + 1
    w_out = (w + 2 * p - k) // s + 1
    nc, hw, ohw = n * c, h * w, h_out * w_out
    out_w = d_out * ohw

    # Grid: prefer 2 parallel steps (v7x has 2 TensorCores); add more only if a
    # per-step input block would not fit comfortably in scoped VMEM.
    bytes_per_slice = d * hw * x.dtype.itemsize
    budget = 6 << 20  # ~6 MiB per block (double-buffered -> well under 32 MiB)
    grid_steps = 2 if (nc >= 2 and nc % 2 == 0) else 1
    while grid_steps < nc and (nc // grid_steps) * bytes_per_slice > budget:
        grid_steps += 1
        while nc % grid_steps:
            grid_steps += 1
    nc_tile = nc // grid_steps

    # Fused H/W pooling matrix, padding folded in:
    #   phw[oh*Wo+ow, h*W+w] = 1 iff (h, w) lies inside output window (oh, ow)
    ph = _pool_matrix(h_out, h, k, s, p)          # (Ho, H)
    pw = _pool_matrix(w_out, w, k, s, p)          # (Wo, W)
    phwt = jnp.kron(ph, pw).T                     # (H*W, Ho*Wo)

    # Static, clipped depth windows (count_include_pad=True -> divisor is k^3).
    d_windows = tuple(
        tuple(dd for dd in range(od * s - p, od * s - p + k) if 0 <= dd < d)
        for od in range(d_out)
    )

    # Free reshape of contiguous data; no padding pass over HBM.
    x_blocks = x.reshape(grid_steps, nc_tile, d, hw)

    kernel = functools.partial(
        _avgpool3d_kernel,
        d_windows=d_windows,
        ohw=ohw,
        inv_div=1.0 / float(k ** 3),
    )

    out = pl.pallas_call(
        kernel,
        grid=(grid_steps,),
        in_specs=[
            # Leading grid dim squeezed; last two dims are full extents.
            pl.BlockSpec((None, nc_tile, d, hw), lambda i: (i, 0, 0, 0)),
            # Constant block index -> fetched once, reused across grid steps.
            pl.BlockSpec((hw, ohw), lambda i: (0, 0)),
        ],
        out_specs=pl.BlockSpec((None, nc_tile, out_w), lambda i: (i, 0, 0)),
        out_shape=jax.ShapeDtypeStruct((grid_steps, nc_tile, out_w), x.dtype),
        compiler_params=pltpu.CompilerParams(dimension_semantics=("parallel",)),
    )(x_blocks, phwt)

    return out.reshape(n, c, d_out, h_out, w_out)


def _reference_avg_pool3d(x, kernel_size, stride, padding):
    """Pure-JAX reference matching F.avg_pool3d defaults (count_include_pad=True)."""
    k, s, p = kernel_size, stride, padding
    summed = jax.lax.reduce_window(
        x,
        0.0,
        jax.lax.add,
        window_dimensions=(1, 1, k, k, k),
        window_strides=(1, 1, s, s, s),
        padding=[(0, 0), (0, 0), (p, p), (p, p), (p, p)],
    )
    return summed / float(k ** 3)


if __name__ == "__main__":
    kernel_size = 3
    padding = 1
    stride = 2

    # Small shapes consistent with the module: (batch, channels, D, H, W)
    key = jax.random.PRNGKey(0)
    x = jax.random.normal(key, (2, 4, 16, 16, 16), dtype=jnp.float32)

    out = avg_pool3d_pallas(x, kernel_size, stride, padding)
    out = jax.block_until_ready(out)

    ref = _reference_avg_pool3d(x, kernel_size, stride, padding)
    assert out.shape == ref.shape, (out.shape, ref.shape)
    assert jnp.allclose(out, ref, atol=1e-5, rtol=1e-5), "mismatch vs reference"

    print("KERNEL_OK")
</pallas_src>

<mosaic_0001>
module attributes {stable_mosaic.version = 11 : i64} {
  func.func @_avgpool3d_kernel(%arg0: i32, %arg1: memref<1x4x16x256xf32, #tpu.memory_space<vmem>>, %arg2: memref<256x64xf32, #tpu.memory_space<vmem>>, %arg3: memref<1x4x512xf32, #tpu.memory_space<vmem>>) attributes {dimension_semantics = [#tpu.dimension_semantics<parallel>], iteration_bounds = array<i64: 2>, scalar_prefetch = 0 : i64, scratch_operands = 0 : i64, tpu.core_type = #tpu.core_type<tc>, window_params = [{transform_indices = @transform_0, window_bounds = array<i64: 1, 4, 16, 256>}, {pipeline_mode = #tpu.pipeline_mode<synchronous>, transform_indices = @transform_1, window_bounds = array<i64: 256, 64>}, {transform_indices = @transform_2, window_bounds = array<i64: 1, 4, 512>}]} {
    %c0 = arith.constant 0 : index
    %c0_0 = arith.constant 0 : index
    %c0_1 = arith.constant 0 : index
    %c0_2 = arith.constant 0 : index
    %0 = vector.load %arg1[%c0, %c0_0, %c0_1, %c0_2] : memref<1x4x16x256xf32, #tpu.memory_space<vmem>>, vector<1x4x16x256xf32>
    %1 = vector.shape_cast %0 : vector<1x4x16x256xf32> to vector<4x16x256xf32>
    %2 = vector.shape_cast %1 : vector<4x16x256xf32> to vector<64x256xf32>
    %c0_3 = arith.constant 0 : index
    %c0_4 = arith.constant 0 : index
    %3 = vector.load %arg2[%c0_3, %c0_4] : memref<256x64xf32, #tpu.memory_space<vmem>>, vector<256x64xf32>
    %cst = arith.constant dense<0.000000e+00> : vector<64x64xf32>
    %4 = tpu.matmul %2, %3, %cst {dimension_numbers = #tpu.dot_dimension_numbers<[1], [0], [0], [1], [0, 0, 1, 1], [], []>} : vector<64x256xf32>, vector<256x64xf32>, vector<64x64xf32> -> vector<64x64xf32>
    %cst_5 = arith.constant 0.0370370373 : f32
    %5 = vector.broadcast %cst_5 : f32 to vector<64x64xf32>
    %6 = arith.mulf %4, %5 : vector<64x64xf32>
    %7 = vector.shape_cast %6 : vector<64x64xf32> to vector<4x16x64xf32>
    %8 = vector.extract_strided_slice %7 {offsets = [0, 0, 0], sizes = [4, 1, 64], strides = [1, 1, 1]} : vector<4x16x64xf32> to vector<4x1x64xf32>
    %9 = vector.shape_cast %8 : vector<4x1x64xf32> to vector<4x64xf32>
    %10 = vector.extract_strided_slice %7 {offsets = [0, 1, 0], sizes = [4, 1, 64], strides = [1, 1, 1]} : vector<4x16x64xf32> to vector<4x1x64xf32>
    %11 = vector.shape_cast %10 : vector<4x1x64xf32> to vector<4x64xf32>
    %12 = arith.addf %9, %11 : vector<4x64xf32>
    %c0_6 = arith.constant 0 : index
    %c0_7 = arith.constant 0 : index
    %c0_8 = arith.constant 0 : index
    %13 = vector.load %arg3[%c0_6, %c0_7, %c0_8] : memref<1x4x512xf32, #tpu.memory_space<vmem>>, vector<1x4x64xf32>
    %14 = vector.shape_cast %13 : vector<1x4x64xf32> to vector<4x64xf32>
    %15 = vector.shape_cast %12 : vector<4x64xf32> to vector<1x4x64xf32>
    tpu.vector_store %arg3[%c0_6, %c0_7, %c0_8], %15 {strides = array<i32>} : memref<1x4x512xf32, #tpu.memory_space<vmem>>, vector<1x4x64xf32>,
    %16 = vector.extract_strided_slice %7 {offsets = [0, 1, 0], sizes = [4, 1, 64], strides = [1, 1, 1]} : vector<4x16x64xf32> to vector<4x1x64xf32>
    %17 = vector.shape_cast %16 : vector<4x1x64xf32> to vector<4x64xf32>
    %18 = vector.extract_strided_slice %7 {offsets = [0, 2, 0], sizes = [4, 1, 64], strides = [1, 1, 1]} : vector<4x16x64xf32> to vector<4x1x64xf32>
    %19 = vector.shape_cast %18 : vector<4x1x64xf32> to vector<4x64xf32>
    %20 = arith.addf %17, %19 : vector<4x64xf32>
    %21 = vector.extract_strided_slice %7 {offsets = [0, 3, 0], sizes = [4, 1, 64], strides = [1, 1, 1]} : vector<4x16x64xf32> to vector<4x1x64xf32>
    %22 = vector.shape_cast %21 : vector<4x1x64xf32> to vector<4x64xf32>
    %23 = arith.addf %20, %22 : vector<4x64xf32>
    %c0_9 = arith.constant 0 : index
    %c0_10 = arith.constant 0 : index
    %c64 = arith.constant 64 : index
    %24 = vector.load %arg3[%c0_9, %c0_10, %c64] : memref<1x4x512xf32, #tpu.memory_space<vmem>>, vector<1x4x64xf32>
    %25 = vector.shape_cast %24 : vector<1x4x64xf32> to vector<4x64xf32>
    %26 = vector.shape_cast %23 : vector<4x64xf32> to vector<1x4x64xf32>
    tpu.vector_store %arg3[%c0_9, %c0_10, %c64], %26 {strides = array<i32>} : memref<1x4x512xf32, #tpu.memory_space<vmem>>, vector<1x4x64xf32>,
    %27 = vector.extract_strided_slice %7 {offsets = [0, 3, 0], sizes = [4, 1, 64], strides = [1, 1, 1]} : vector<4x16x64xf32> to vector<4x1x64xf32>
    %28 = vector.shape_cast %27 : vector<4x1x64xf32> to vector<4x64xf32>
    %29 = vector.extract_strided_slice %7 {offsets = [0, 4, 0], sizes = [4, 1, 64], strides = [1, 1, 1]} : vector<4x16x64xf32> to vector<4x1x64xf32>
    %30 = vector.shape_cast %29 : vector<4x1x64xf32> to vector<4x64xf32>
    %31 = arith.addf %28, %30 : vector<4x64xf32>
    %32 = vector.extract_strided_slice %7 {offsets = [0, 5, 0], sizes = [4, 1, 64], strides = [1, 1, 1]} : vector<4x16x64xf32> to vector<4x1x64xf32>
    %33 = vector.shape_cast %32 : vector<4x1x64xf32> to vector<4x64xf32>
    %34 = arith.addf %31, %33 : vector<4x64xf32>
    %c0_11 = arith.constant 0 : index
    %c0_12 = arith.constant 0 : index
    %c128 = arith.constant 128 : index
    %35 = vector.load %arg3[%c0_11, %c0_12, %c128] : memref<1x4x512xf32, #tpu.memory_space<vmem>>, vector<1x4x64xf32>
    %36 = vector.shape_cast %35 : vector<1x4x64xf32> to vector<4x64xf32>
    %37 = vector.shape_cast %34 : vector<4x64xf32> to vector<1x4x64xf32>
    tpu.vector_store %arg3[%c0_11, %c0_12, %c128], %37 {strides = array<i32>} : memref<1x4x512xf32, #tpu.memory_space<vmem>>, vector<1x4x64xf32>,
    %38 = vector.extract_strided_slice %7 {offsets = [0, 5, 0], sizes = [4, 1, 64], strides = [1, 1, 1]} : vector<4x16x64xf32> to vector<4x1x64xf32>
    %39 = vector.shape_cast %38 : vector<4x1x64xf32> to vector<4x64xf32>
    %40 = vector.extract_strided_slice %7 {offsets = [0, 6, 0], sizes = [4, 1, 64], strides = [1, 1, 1]} : vector<4x16x64xf32> to vector<4x1x64xf32>
    %41 = vector.shape_cast %40 : vector<4x1x64xf32> to vector<4x64xf32>
    %42 = arith.addf %39, %41 : vector<4x64xf32>
    %43 = vector.extract_strided_slice %7 {offsets = [0, 7, 0], sizes = [4, 1, 64], strides = [1, 1, 1]} : vector<4x16x64xf32> to vector<4x1x64xf32>
    %44 = vector.shape_cast %43 : vector<4x1x64xf32> to vector<4x64xf32>
    %45 = arith.addf %42, %44 : vector<4x64xf32>
    %c0_13 = arith.constant 0 : index
    %c0_14 = arith.constant 0 : index
    %c192 = arith.constant 192 : index
    %46 = vector.load %arg3[%c0_13, %c0_14, %c192] : memref<1x4x512xf32, #tpu.memory_space<vmem>>, vector<1x4x64xf32>
    %47 = vector.shape_cast %46 : vector<1x4x64xf32> to vector<4x64xf32>
    %48 = vector.shape_cast %45 : vector<4x64xf32> to vector<1x4x64xf32>
    tpu.vector_store %arg3[%c0_13, %c0_14, %c192], %48 {strides = array<i32>} : memref<1x4x512xf32, #tpu.memory_space<vmem>>, vector<1x4x64xf32>,
    %49 = vector.extract_strided_slice %7 {offsets = [0, 7, 0], sizes = [4, 1, 64], strides = [1, 1, 1]} : vector<4x16x64xf32> to vector<4x1x64xf32>
    %50 = vector.shape_cast %49 : vector<4x1x64xf32> to vector<4x64xf32>
    %51 = vector.extract_strided_slice %7 {offsets = [0, 8, 0], sizes = [4, 1, 64], strides = [1, 1, 1]} : vector<4x16x64xf32> to vector<4x1x64xf32>
    %52 = vector.shape_cast %51 : vector<4x1x64xf32> to vector<4x64xf32>
    %53 = arith.addf %50, %52 : vector<4x64xf32>
    %54 = vector.extract_strided_slice %7 {offsets = [0, 9, 0], sizes = [4, 1, 64], strides = [1, 1, 1]} : vector<4x16x64xf32> to vector<4x1x64xf32>
    %55 = vector.shape_cast %54 : vector<4x1x64xf32> to vector<4x64xf32>
    %56 = arith.addf %53, %55 : vector<4x64xf32>
    %c0_15 = arith.constant 0 : index
    %c0_16 = arith.constant 0 : index
    %c256 = arith.constant 256 : index
    %57 = vector.load %arg3[%c0_15, %c0_16, %c256] : memref<1x4x512xf32, #tpu.memory_space<vmem>>, vector<1x4x64xf32>
    %58 = vector.shape_cast %57 : vector<1x4x64xf32> to vector<4x64xf32>
    %59 = vector.shape_cast %56 : vector<4x64xf32> to vector<1x4x64xf32>
    tpu.vector_store %arg3[%c0_15, %c0_16, %c256], %59 {strides = array<i32>} : memref<1x4x512xf32, #tpu.memory_space<vmem>>, vector<1x4x64xf32>,
    %60 = vector.extract_strided_slice %7 {offsets = [0, 9, 0], sizes = [4, 1, 64], strides = [1, 1, 1]} : vector<4x16x64xf32> to vector<4x1x64xf32>
    %61 = vector.shape_cast %60 : vector<4x1x64xf32> to vector<4x64xf32>
    %62 = vector.extract_strided_slice %7 {offsets = [0, 10, 0], sizes = [4, 1, 64], strides = [1, 1, 1]} : vector<4x16x64xf32> to vector<4x1x64xf32>
    %63 = vector.shape_cast %62 : vector<4x1x64xf32> to vector<4x64xf32>
    %64 = arith.addf %61, %63 : vector<4x64xf32>
    %65 = vector.extract_strided_slice %7 {offsets = [0, 11, 0], sizes = [4, 1, 64], strides = [1, 1, 1]} : vector<4x16x64xf32> to vector<4x1x64xf32>
    %66 = vector.shape_cast %65 : vector<4x1x64xf32> to vector<4x64xf32>
    %67 = arith.addf %64, %66 : vector<4x64xf32>
    %c0_17 = arith.constant 0 : index
    %c0_18 = arith.constant 0 : index
    %c320 = arith.constant 320 : index
    %68 = vector.load %arg3[%c0_17, %c0_18, %c320] : memref<1x4x512xf32, #tpu.memory_space<vmem>>, vector<1x4x64xf32>
    %69 = vector.shape_cast %68 : vector<1x4x64xf32> to vector<4x64xf32>
    %70 = vector.shape_cast %67 : vector<4x64xf32> to vector<1x4x64xf32>
    tpu.vector_store %arg3[%c0_17, %c0_18, %c320], %70 {strides = array<i32>} : memref<1x4x512xf32, #tpu.memory_space<vmem>>, vector<1x4x64xf32>,
    %71 = vector.extract_strided_slice %7 {offsets = [0, 11, 0], sizes = [4, 1, 64], strides = [1, 1, 1]} : vector<4x16x64xf32> to vector<4x1x64xf32>
    %72 = vector.shape_cast %71 : vector<4x1x64xf32> to vector<4x64xf32>
    %73 = vector.extract_strided_slice %7 {offsets = [0, 12, 0], sizes = [4, 1, 64], strides = [1, 1, 1]} : vector<4x16x64xf32> to vector<4x1x64xf32>
    %74 = vector.shape_cast %73 : vector<4x1x64xf32> to vector<4x64xf32>
    %75 = arith.addf %72, %74 : vector<4x64xf32>
    %76 = vector.extract_strided_slice %7 {offsets = [0, 13, 0], sizes = [4, 1, 64], strides = [1, 1, 1]} : vector<4x16x64xf32> to vector<4x1x64xf32>
    %77 = vector.shape_cast %76 : vector<4x1x64xf32> to vector<4x64xf32>
    %78 = arith.addf %75, %77 : vector<4x64xf32>
    %c0_19 = arith.constant 0 : index
    %c0_20 = arith.constant 0 : index
    %c384 = arith.constant 384 : index
    %79 = vector.load %arg3[%c0_19, %c0_20, %c384] : memref<1x4x512xf32, #tpu.memory_space<vmem>>, vector<1x4x64xf32>
    %80 = vector.shape_cast %79 : vector<1x4x64xf32> to vector<4x64xf32>
    %81 = vector.shape_cast %78 : vector<4x64xf32> to vector<1x4x64xf32>
    tpu.vector_store %arg3[%c0_19, %c0_20, %c384], %81 {strides = array<i32>} : memref<1x4x512xf32, #tpu.memory_space<vmem>>, vector<1x4x64xf32>,
    %82 = vector.extract_strided_slice %7 {offsets = [0, 13, 0], sizes = [4, 1, 64], strides = [1, 1, 1]} : vector<4x16x64xf32> to vector<4x1x64xf32>
    %83 = vector.shape_cast %82 : vector<4x1x64xf32> to vector<4x64xf32>
    %84 = vector.extract_strided_slice %7 {offsets = [0, 14, 0], sizes = [4, 1, 64], strides = [1, 1, 1]} : vector<4x16x64xf32> to vector<4x1x64xf32>
    %85 = vector.shape_cast %84 : vector<4x1x64xf32> to vector<4x64xf32>
    %86 = arith.addf %83, %85 : vector<4x64xf32>
    %87 = vector.extract_strided_slice %7 {offsets = [0, 15, 0], sizes = [4, 1, 64], strides = [1, 1, 1]} : vector<4x16x64xf32> to vector<4x1x64xf32>
    %88 = vector.shape_cast %87 : vector<4x1x64xf32> to vector<4x64xf32>
    %89 = arith.addf %86, %88 : vector<4x64xf32>
    %c0_21 = arith.constant 0 : index
    %c0_22 = arith.constant 0 : index
    %c448 = arith.constant 448 : index
    %90 = vector.load %arg3[%c0_21, %c0_22, %c448] : memref<1x4x512xf32, #tpu.memory_space<vmem>>, vector<1x4x64xf32>
    %91 = vector.shape_cast %90 : vector<1x4x64xf32> to vector<4x64xf32>
    %92 = vector.shape_cast %89 : vector<4x64xf32> to vector<1x4x64xf32>
    tpu.vector_store %arg3[%c0_21, %c0_22, %c448], %92 {strides = array<i32>} : memref<1x4x512xf32, #tpu.memory_space<vmem>>, vector<1x4x64xf32>,
    return
  }
  func.func @transform_0(%arg0: i32) -> (i32, i32, i32, i32) {
    %c0_i32 = arith.constant 0 : i32
    %c0_i32_0 = arith.constant 0 : i32
    %c0_i32_1 = arith.constant 0 : i32
    %c0_i32_2 = arith.constant 0 : i32
    return %arg0, %c0_i32, %c0_i32_0, %c0_i32_1 : i32, i32, i32, i32
  }
  func.func @transform_1(%arg0: i32) -> (i32, i32) {
    %c0_i32 = arith.constant 0 : i32
    %c0_i32_0 = arith.constant 0 : i32
    %c0_i32_1 = arith.constant 0 : i32
    return %c0_i32, %c0_i32_0 : i32, i32
  }
  func.func @transform_2(%arg0: i32) -> (i32, i32, i32) {
    %c0_i32 = arith.constant 0 : i32
    %c0_i32_0 = arith.constant 0 : i32
    %c0_i32_1 = arith.constant 0 : i32
    return %arg0, %c0_i32, %c0_i32_0 : i32, i32, i32
  }
}

</mosaic_0001>

<bundles_post_ra>
// kernel: tpu_custom_call.1
= control target key start
LH: loop header
LB: loop body
LE: loop exit
PB: predicated region body
PF: predicated region fallthrough
CT: control target
= control target key end

     0   :  { %7 = vsyncpa [#allocation3], 0  ;;  %s1151_s0 = inlined_call_operand.vmem [shape: f32[2,4,16,256], index: 0, kind: input, shape index: {}]   ;;  %s1152_s1 = inlined_call_operand.vmem [shape: f32[256,64], index: 1, kind: input, shape index: {}]   ;;  %s1153_s2 = inlined_call_operand.hbm [shape: f32[2,4,512], index: 2, kind: output, shape index: {}]  }
   0x1   :  { %9 = vsyncpa [#allocation3 + $0x1], 0  ;;  %s794_s9 = smov 0   ;;  %s796_s10 = smov 0  }
   0x2   :  { %s798_s11 = smov 0   ;;  %s800_s12 = smov 0  }
   0x3 LB: > { %s815_s13 = sadd.s32 4294967295, %s775_s12   ;;  %s573_s14 = sadd.s32 4294967294, %s775_s12   ;;  %s775_s12 = sphi %s800_s12, %s1159_s12   ;;  %s771_s11 = sphi %s798_s11, %s1158_s11   ;;  %s767_s10 = sphi %s796_s10, %s1157_s10   ;;  %s763_s9 = sphi %s794_s9, %s1156_s9  }
   0x4   : > { %s819_s15 = sadd.s32 1, %s775_s12   ;;  %s69_s16 = sadd.s32 1, %s771_s11 }
   0x5   : > { %s66_s17 = ssub.s32 %s775_s12, %s819_s15  ;;  %p79_p0 = scmp.ne.s32.totalorder %s771_s11, %s767_s10 }
   0x6   : > { %p67_p1 = scmp.eq.s32.totalorder %s66_s17, 0  ;;  %p80_p2 = scmp.eq.s32.totalorder %s815_s13, 1 }
   0x7   : > { %p85_p3 = scmp.ne.s32.totalorder %s767_s10, %s763_s9  ;;  %p86_p4 = scmp.eq.s32.totalorder %s573_s14, 1 }
   0x8   : > { %s830_s18 = scalar_select %p67_p1, %s771_s11, %s69_s16  }
   0x9   : > { %p832_p5 = por %p80_p2, %p79_p0  ;;  %p836_p6 = por %p86_p4, %p85_p3 }
   0xa   : > { %p576_p7 = scmp.ge.s32.totalorder %s775_s12, 1  ;;  %p115_p8 = scmp.lt.s32.totalorder %s775_s12, 3 }
   0xc   : > { %p116_p9 = pnand %p576_p7, %p115_p8 }
   0xd   : > { %p137_p10 = scmp.lt.s32.totalorder (!%p116_p9), %s815_s13, 1  ;;  %s134_s5 = sand.u32 (!%p116_p9), 1, %s767_s10  }
   0xe   : > { %119 = sbr.rel (%p116_p9) target bundleno = 415 (0x19f), region = 28  ;;  %s777_s6 = smov (!%p116_p9), 64  }
   0xf   : > { %s577_s7 = sshll.u32 (!%p116_p9), %s134_s5, 4  ;;  %s586_s14 = sshll.u32 (!%p116_p9), %s815_s13, 8 }
  0x10   : > { %s1067_s8 = scalar_lea.vmem (!%p116_p9), [#allocation2], %s577_s7  ;;  %s1113_s22 = scalar_lea.hbm (!%p116_p9), %s1153_s2, %s586_s14 }
  0x11   : > { %s500_s23 = scalar_lea.sflag (!%p116_p9), [#allocation3], %s134_s5  ;;  %s778_s25 = smov (!%p116_p9), [#allocation2]  }
  0x13   : > { %v189_v0 = vld [vmem:[%s1152_s1 + $0xf8] sm:$0xff]  ;;  %v188_v2 = vld [vmem:[%s1152_s1 + $0xf0] sm:$0xff]  ;;  %v187_v4 = vld [vmem:[%s1152_s1 + $0xe8] sm:$0xff]  ;;  %s138_s29 = scalar_select %p137_p10, %s815_s13, 1  ;;  %vm324_vm0 = vcmask 1041409   ;;  %vm326_vm1 = vcmask 1045509  }
  0x14   : > { %v173_v1 = vld [vmem:[%s1152_s1 + $0x78] sm:$0xff]  ;;  %587 = vmatprep.subr.mxu0 %v189_v0  ;;  %643 = vmatprep.subr.mxu1 %v189_v0  ;;  %v172_v3 = vld [vmem:[%s1152_s1 + $0x70] sm:$0xff]  ;;  %v171_v5 = vld [vmem:[%s1152_s1 + $0x68] sm:$0xff]  ;;  %vm329_vm2 = vcmask 1042434   ;;  %vm331_vm3 = vcmask 1046534   ;;  %vm334_vm4 = vcmask 1043459  }
  0x15   : > { %588 = vmatpush3.msra.mxu0 %v173_v1  ;;  %659 = vmatpush3.msra.mxu1 %v173_v1  ;;  %v186_v6 = vld [vmem:[%s1152_s1 + $0xe0] sm:$0xff]  ;;  %v185_v8 = vld [vmem:[%s1152_s1 + $0xd8] sm:$0xff]  ;;  %v184_v10 = vld [vmem:[%s1152_s1 + $0xd0] sm:$0xff]  ;;  %s585_s16 = sshll.u32 %s138_s29, 7  ;;  %vm336_vm5 = vcmask 1047559   ;;  %vm339_vm6 = vcmask 519168  }
  0x16   : > { %589 = vmatprep.subr.mxu0 %v188_v2  ;;  %644 = vmatprep.subr.mxu1 %v188_v2  ;;  %v170_v7 = vld [vmem:[%s1152_s1 + $0x60] sm:$0xff]  ;;  %v169_v9 = vld [vmem:[%s1152_s1 + $0x58] sm:$0xff]  ;;  %v168_v11 = vld [vmem:[%s1152_s1 + $0x50] sm:$0xff]  ;;  %s937_s28 = scalar_lea.vmem %s1151_s0, %s585_s16  ;;  %vm369_vm7 = vcmask 1043968   ;;  %s514_s16 = sshll.u32 %s1067_s8, 4  ;;  %s515_s16 = int_to_ptr.vmem [resolvable:$true] %s514_s16 }
  0x17   : > { %590 = vmatpush3.msra.mxu0 %v172_v3  ;;  %660 = vmatpush3.msra.mxu1 %v172_v3  ;;  %v183_v12 = vld [vmem:[%s1152_s1 + $0xc8] sm:$0xff]  ;;  %v182_v14 = vld [vmem:[%s1152_s1 + $0xc0] sm:$0xff]  ;;  %v181_v16 = vld [vmem:[%s1152_s1 + $0xb8] sm:$0xff]  ;;  %s715_s24 = scalar_lea.vmem %s515_s16, 256  ;;  %s719_s13 = sshll.u32 %s778_s25, 4  ;;  %s720_s13 = int_to_ptr.vmem [resolvable:$false] %s719_s13 }
  0x18   : > { %591 = vmatprep.subr.mxu0 %v187_v4  ;;  %645 = vmatprep.subr.mxu1 %v187_v4  ;;  %v167_v13 = vld [vmem:[%s1152_s1 + $0x48] sm:$0xff]  ;;  %v166_v15 = vld [vmem:[%s1152_s1 + $0x40] sm:$0xff]  ;;  %v165_v17 = vld [vmem:[%s1152_s1 + $0x38] sm:$0xff]  ;;  %p716_p11 = scmp.ne.s32.totalorder %s515_s16, %s715_s24  ;;  %s721_s26 = scalar_lea.vmem %s720_s13, 512 }
  0x19   : > { %592 = vmatpush3.msra.mxu0 %v171_v5  ;;  %661 = vmatpush3.msra.mxu1 %v171_v5  ;;  %v180_v18 = vld [vmem:[%s1152_s1 + $0xb0] sm:$0xff]  ;;  %v179_v20 = vld [vmem:[%s1152_s1 + $0xa8] sm:$0xff]  ;;  %v178_v22 = vld [vmem:[%s1152_s1 + $0xa0] sm:$0xff]  ;;  %p722_p0 = scmp.lt.s32.totalorder %s515_s16, %s720_s13  ;;  %p723_p1 = scmp.lt.s32.totalorder %s721_s26, %s715_s24 }
  0x1a   : > { %593 = vmatprep.subr.mxu0 %v186_v6  ;;  %646 = vmatprep.subr.mxu1 %v186_v6  ;;  %v164_v19 = vld [vmem:[%s1152_s1 + $0x30] sm:$0xff]  ;;  %v163_v21 = vld [vmem:[%s1152_s1 + $0x28] sm:$0xff]  ;;  %v162_v23 = vld [vmem:[%s1152_s1 + $0x20] sm:$0xff]  ;;  %p717_p12 = pnand %p716_p11, %p832_p5 }
  0x1b   : > { %594 = vmatpush3.msra.mxu0 %v170_v7  ;;  %662 = vmatpush3.msra.mxu1 %v170_v7  ;;  %v177_v24 = vld [vmem:[%s1152_s1 + $0x98] sm:$0xff]  ;;  %v176_v26 = vld [vmem:[%s1152_s1 + $0x90] sm:$0xff]  ;;  %v175_v28 = vld [vmem:[%s1152_s1 + $0x88] sm:$0xff]  ;;  %p724_p2 = por %p723_p1, %p722_p0 }
  0x1c   : > { %595 = vmatprep.subr.mxu0 %v185_v8  ;;  %647 = vmatprep.subr.mxu1 %v185_v8  ;;  %v161_v25 = vld [vmem:[%s1152_s1 + $0x18] sm:$0xff]  ;;  %v160_v27 = vld [vmem:[%s1152_s1 + $0x10] sm:$0xff]  ;;  %v159_v29 = vld [vmem:[%s1152_s1 + $0x8] sm:$0xff]  ;;  %p718_p13 = pneg %p717_p12 }
  0x1d   : > { %596 = vmatpush3.msra.mxu0 %v169_v9  ;;  %663 = vmatpush3.msra.mxu1 %v169_v9  ;;  %v174_v30 = vld [vmem:[%s1152_s1 + $0x80] sm:$0xff]  ;;  %v143_v32 = vld [vmem:[%s937_s28 + $0x8] sm:$0xff]  ;;  %v145_v36 = vld [vmem:[%s937_s28 + $0x18] sm:$0xff] }
  0x1e   : > { %597 = vmatprep.subr.mxu0 %v184_v10  ;;  %648 = vmatprep.subr.mxu1 %v184_v10  ;;  %v158_v31 = vld [vmem:[%s1152_s1] sm:$0xff]  ;;  %v151_v33 = vld [vmem:[%s937_s28 + $0x48] sm:$0xff]  ;;  %v153_v37 = vld [vmem:[%s937_s28 + $0x58] sm:$0xff]  ;;  %p725_p3 = pnand %p724_p2, %p718_p13 }
  0x1f   : > { %598 = vmatpush3.msra.mxu0 %v168_v11  ;;  %664 = vmatpush3.msra.mxu1 %v168_v11  ;;  %v142_v34 = vld [vmem:[%s937_s28] sm:$0xff]  ;;  %v144_v38 = vld [vmem:[%s937_s28 + $0x10] sm:$0xff]  ;;  %v147_v40 = vld [vmem:[%s937_s28 + $0x28] sm:$0xff] }
  0x20   : > { %599 = vmatprep.subr.mxu0 %v183_v12  ;;  %649 = vmatprep.subr.mxu1 %v183_v12  ;;  %v150_v35 = vld [vmem:[%s937_s28 + $0x40] sm:$0xff]  ;;  %v152_v39 = vld [vmem:[%s937_s28 + $0x50] sm:$0xff]  ;;  %v155_v41 = vld [vmem:[%s937_s28 + $0x68] sm:$0xff] }
  0x21   : > { %600 = vmatpush3.msra.mxu0 %v167_v13  ;;  %665 = vmatpush3.msra.mxu1 %v167_v13  ;;  %v146_v42 = vld [vmem:[%s937_s28 + $0x20] sm:$0xff]  ;;  %v149_v44 = vld [vmem:[%s937_s28 + $0x38] sm:$0xff]  ;;  %v148_v46 = vld [vmem:[%s937_s28 + $0x30] sm:$0xff] }
  0x22   : > { %601 = vmatprep.subr.mxu0 %v182_v14  ;;  %650 = vmatprep.subr.mxu1 %v182_v14  ;;  %v154_v43 = vld [vmem:[%s937_s28 + $0x60] sm:$0xff]  ;;  %v157_v45 = vld [vmem:[%s937_s28 + $0x78] sm:$0xff]  ;;  %v156_v47 = vld [vmem:[%s937_s28 + $0x70] sm:$0xff] }
  0x23   : > { %602 = vmatpush3.msra.mxu0 %v166_v15  ;;  %666 = vmatpush3.msra.mxu1 %v166_v15 }
  0x24   : > { %603 = vmatprep.subr.mxu0 %v181_v16  ;;  %651 = vmatprep.subr.mxu1 %v181_v16 }
  0x25   : > { %604 = vmatpush3.msra.mxu0 %v165_v17  ;;  %667 = vmatpush3.msra.mxu1 %v165_v17 }
  0x26   : > { %605 = vmatprep.subr.mxu0 %v180_v18  ;;  %652 = vmatprep.subr.mxu1 %v180_v18 }
  0x27   : > { %606 = vmatpush3.msra.mxu0 %v164_v19  ;;  %668 = vmatpush3.msra.mxu1 %v164_v19 }
  0x28   : > { %607 = vmatprep.subr.mxu0 %v179_v20  ;;  %653 = vmatprep.subr.mxu1 %v179_v20 }
  0x29   : > { %608 = vmatpush3.msra.mxu0 %v163_v21  ;;  %669 = vmatpush3.msra.mxu1 %v163_v21 }
  0x2a   : > { %609 = vmatprep.subr.mxu0 %v178_v22  ;;  %654 = vmatprep.subr.mxu1 %v178_v22 }
  0x2b   : > { %610 = vmatpush3.msra.mxu0 %v162_v23  ;;  %670 = vmatpush3.msra.mxu1 %v162_v23 }
  0x2c   : > { %611 = vmatprep.subr.mxu0 %v177_v24  ;;  %655 = vmatprep.subr.mxu1 %v177_v24 }
  0x2d   : > { %612 = vmatpush3.msra.mxu0 %v161_v25  ;;  %671 = vmatpush3.msra.mxu1 %v161_v25 }
  0x2e   : > { %613 = vmatprep.subr.mxu0 %v176_v26  ;;  %656 = vmatprep.subr.mxu1 %v176_v26 }
  0x2f   : > { %614 = vmatpush3.msra.mxu0 %v160_v27  ;;  %672 = vmatpush3.msra.mxu1 %v160_v27 }
  0x30   : > { %615 = vmatprep.subr.mxu0 %v175_v28  ;;  %657 = vmatprep.subr.mxu1 %v175_v28 }
  0x31   : > { %616 = vmatpush3.msra.mxu0 %v159_v29  ;;  %673 = vmatpush3.msra.mxu1 %v159_v29 }
  0x32   : > { %617 = vmatprep.subr.mxu0 %v174_v30  ;;  %658 = vmatprep.subr.mxu1 %v174_v30 }
  0x33   : > { %618 = vmatpush3.msra.mxu0 %v158_v31  ;;  %674 = vmatpush3.msra.mxu1 %v158_v31 }
  0x34   : > { %254 = vmatprep.mubr.f32.mxu0 %v143_v32  ;;  %274 = vmatprep.mubr.f32.mxu1 %v151_v33 }
  0x35   : > { %255 = vmatmul.mubr.f32.vlgmr.msra.gmra.mxu0 %v142_v34  ;;  %275 = vmatmul.mubr.f32.vlgmr.msra.gmra.mxu1 %v150_v35 }
  0x36   : > { %259 = vmatprep.mubr.f32.mxu0 %v145_v36  ;;  %279 = vmatprep.mubr.f32.mxu1 %v153_v37 }
  0x39   : > { %260 = vmatmul.mubr.f32.gmra.mxu0 %v144_v38  ;;  %280 = vmatmul.mubr.f32.gmra.mxu1 %v152_v39 }
  0x3a   : > { %264 = vmatprep.mubr.f32.mxu0 %v147_v40  ;;  %284 = vmatprep.mubr.f32.mxu1 %v155_v41 }
  0x3d   : > { %265 = vmatmul.mubr.f32.gmra.mxu0 %v146_v42  ;;  %285 = vmatmul.mubr.f32.gmra.mxu1 %v154_v43 }
  0x3e   : > { %269 = vmatprep.mubr.f32.mxu0 %v149_v44  ;;  %289 = vmatprep.mubr.f32.mxu1 %v157_v45 }
  0x41   : > { %270 = vmatmul.mubr.f32.gmra.mxu0 %v148_v46  ;;  %290 = vmatmul.mubr.f32.gmra.mxu1 %v156_v47 }
  0xf5   : > { %v619_v48 = vpop.f32.mrf.mxu0  ;;  %v631_v49 = vpop.f32.mrf.mxu1 }
  0xf7   : > { %v620_v50 = vpop.f32.mrf.mxu0  ;;  %v632_v51 = vpop.f32.mrf.mxu1 }
  0xf8   : > { %v621_v52 = vadd.f32 %v620_v50, %v619_v48  ;;  %v633_v53 = vadd.f32 %v632_v51, %v631_v49 }
  0xf9   : > { %v622_v54 = vpop.f32.mrf.mxu0  ;;  %v634_v55 = vpop.f32.mrf.mxu1 }
  0xfa   : > { %v295_v56 = vmul.f32 0.037037037, %v621_v52  ;;  %v299_v57 = vmul.f32 0.037037037, %v633_v53 }
  0xfb   : > { %v623_v58 = vpop.f32.mrf.mxu0  ;;  %v635_v59 = vpop.f32.mrf.mxu1 }
  0xfc   : > { %v307_v60 = vrot.slane %v295_v56, 1  ;;  %v309_v61 = vrot.slane %v299_v57, 1  ;;  %v624_v62 = vadd.f32 %v623_v58, %v622_v54  ;;  %v636_v63 = vadd.f32 %v635_v59, %v634_v55 }
  0xfd   : > { %v625_v0 = vpop.f32.mrf.mxu0  ;;  %v637_v1 = vpop.f32.mrf.mxu1  ;;  %v341_v3 = vrot.slane %v295_v56, 2  ;;  %v343_v5 = vrot.slane %v299_v57, 2 }
  0xfe   : > { %v961_v2 = vadd.f32 %v307_v60, %v295_v56  ;;  %v963_v4 = vadd.f32 %v309_v61, %v299_v57  ;;  %v296_v6 = vmul.f32 0.037037037, %v624_v62  ;;  %v300_v7 = vmul.f32 0.037037037, %v636_v63 }
  0xff   : > { %v626_v8 = vpop.f32.mrf.mxu0  ;;  %v638_v12 = vpop.f32.mrf.mxu1 }
 0x100   : > { %v966_v9 = vadd.f32 %v341_v3, %v961_v2  ;;  %v328_v10 = vrot.slane %v963_v4, 6  ;;  %v627_v11 = vadd.f32 %v626_v8, %v625_v0  ;;  %v970_v13 = vadd.f32 %v343_v5, %v963_v4 }
 0x101   : > { %v403_v14 = vrot.slane %v296_v6, 1  ;;  %v415_v15 = vrot.slane %v296_v6, 2  ;;  %v405_v16 = vrot.slane %v300_v7, 1  ;;  %v628_v17 = vpop.f32.mrf.mxu0  ;;  %v417_v21 = vrot.slane %v300_v7, 2  ;;  %v640_v30 = vpop.f32.mrf.mxu1 }
 0x102   : > { %v357_v18 = vrot.slane %v966_v9, 1  ;;  %v371_v19 = vrot.slane %v966_v9, 3  ;;  %v382_v20 = vcombine.high %v966_v9, %v966_v9  ;;  %v297_v28 = vmul.f32 0.037037037, %v627_v11 }
 0x103   : > { %v411_v22 = vadd.f32 %v403_v14, %v295_v56  ;;  %v446_v23 = vadd.f32 %v403_v14, %v296_v6  ;;  %v413_v24 = vadd.f32 %v405_v16, %v299_v57  ;;  %v448_v25 = vadd.f32 %v405_v16, %v300_v7  ;;  %v629_v26 = vpop.f32.mrf.mxu0  ;;  %v641_v48 = vpop.f32.mrf.mxu1 }
 0x104   : > { %v976_v27 = vrot.slane %v382_v20, 1  ;;  %v639_v29 = vadd.f32 %v638_v12, %v637_v1  ;;  %v630_v31 = vadd.f32 %v629_v26, %v628_v17  ;;  %v308_v36 = vrot.slane %v297_v28, 1 }
 0x105   : > { %v423_v32 = vadd.f32 %v415_v15, %v411_v22  ;;  %v450_v33 = vadd.f32 %v446_v23, %v415_v15  ;;  %v425_v34 = vadd.f32 %v417_v21, %v413_v24  ;;  %v978_v35 = vadd.f32 %v448_v25, %v417_v21 }
 0x106   : > { %v342_v37 = vrot.slane %v297_v28, 2  ;;  %v301_v38 = vmul.f32 0.037037037, %v639_v29  ;;  %v298_v39 = vmul.f32 0.037037037, %v630_v31  ;;  %v316_v46 = vadd.f32 %v308_v36, %v297_v28 }
 0x107   : > { %v431_v40 = vcombine.high %v423_v32, %v423_v32  ;;  %v458_v41 = vrot.slane %v450_v33, 1  ;;  %v471_v42 = vrot.slane %v450_v33, 3  ;;  %v482_v43 = vcombine.high %v450_v33, %v450_v33 }
 0x108   : > { %v433_v44 = vcombine.high %v425_v34, %v425_v34  ;;  %v475_v45 = vrot.slane %v978_v35, 1  ;;  %v310_v47 = vrot.slane %v301_v38, 1  ;;  %v344_v51 = vrot.slane %v301_v38, 2 }
 0x109   : > { %v435_v49 = vrot.slane %v431_v40, 3  ;;  %v981_v50 = vrot.slane %v482_v43, 1  ;;  %v404_v52 = vrot.slane %v298_v39, 1  ;;  %v323_v54 = vrot.slane %v316_v46, 7 }
 0x10a   : > { %v439_v53 = vrot.slane %v433_v44, 1  ;;  %v983_v55 = vadd.f32 %v342_v37, %v316_v46  ;;  %v985_v56 = vadd.f32 %v310_v47, %v301_v38  ;;  %v416_v58 = vrot.slane %v298_v39, 2 }
 0x10b   : > { %v412_v57 = vadd.f32 %v404_v52, %v297_v28  ;;  %v447_v59 = vadd.f32 %v404_v52, %v298_v39  ;;  %v642_v60 = vadd.f32 %v641_v48, %v640_v30  ;;  %v325_v61 = vsel %vm324_vm0, %v323_v54, %v961_v2 }
 0x10c   : > { %v372_v62 = vrot.slane %v983_v55, 2  ;;  %v333_v63 = vrot.slane %v985_v56, 5  ;;  %v992_v0 = vadd.f32 %v344_v51, %v985_v56  ;;  %v327_v1 = vsel %vm326_vm1, %v323_v54, %v325_v61 }
 0x10d   : > { %v424_v3 = vadd.f32 %v416_v58, %v412_v57  ;;  %v995_v5 = vadd.f32 %v447_v59, %v416_v58  ;;  %v302_v6 = vmul.f32 0.037037037, %v642_v60  ;;  %v358_v7 = vsel %vm324_vm0, %v983_v55, %v357_v18 }
 0x10e   : > { %v360_v8 = vrot.slane %v970_v13, 7  ;;  %v363_v2 = vrot.slane %v992_v0, 6  ;;  %v461_v11 = vrot.slane %v978_v35, 7  ;;  %v359_v17 = vsel %vm326_vm1, %v983_v55, %v358_v7 }
 0x10f   : > { %v432_v12 = vcombine.high %v424_v3, %v424_v3  ;;  %v472_v14 = vrot.slane %v995_v5, 2  ;;  %v406_v15 = vrot.slane %v302_v6, 1  ;;  %v418_v16 = vrot.slane %v302_v6, 2 }
 0x110   : > { %v459_v20 = vsel %vm324_vm0, %v995_v5, %v458_v41  ;;  %v383_v18 = vcombine.high %v983_v55, %v983_v55  ;;  %v384_v21 = vcombine.high %v970_v13, %v970_v13  ;;  %v361_v26 = vsel %vm329_vm2, %v360_v8, %v359_v17 }
 0x111   : > { %v436_v22 = vrot.slane %v432_v12, 2  ;;  %v473_v23 = vsel %vm324_vm0, %v472_v14, %v471_v42  ;;  %v414_v24 = vadd.f32 %v406_v15, %v301_v38  ;;  %v449_v25 = vadd.f32 %v406_v15, %v302_v6 }
 0x112   : > { %v460_v28 = vsel %vm326_vm1, %v995_v5, %v459_v20  ;;  %v385_v29 = vcombine.high %v992_v0, %v992_v0  ;;  %v387_v30 = vsel %vm324_vm0, %v383_v18, %v976_v27  ;;  %v362_v34 = vsel %vm331_vm3, %v360_v8, %v361_v26 }
 0x113   : > { %v437_v31 = vsel %vm324_vm0, %v436_v22, %v435_v49  ;;  %v426_v32 = vadd.f32 %v418_v16, %v414_v24  ;;  %v453_v33 = vadd.f32 %v449_v25, %v418_v16  ;;  %v364_v37 = vsel %vm334_vm4, %v363_v2, %v362_v34 }
 0x114   : > { %v438_v36 = vsel %vm326_vm1, %v436_v22, %v437_v31  ;;  %v462_v38 = vsel %vm329_vm2, %v461_v11, %v460_v28  ;;  %v388_v39 = vsel %vm326_vm1, %v383_v18, %v387_v30  ;;  %v365_v27 = vsel %vm336_vm5, %v363_v2, %v364_v37 }
 0x115   : > { %v440_v40 = vsel %vm329_vm2, %v439_v53, %v438_v36  ;;  %v434_v41 = vcombine.high %v426_v32, %v426_v32  ;;  %v463_v42 = vsel %vm331_vm3, %v461_v11, %v462_v38  ;;  %366 = vrot.lane.b32.xlu0 %v365_v27, %s777_s6  ;;  %v464_v43 = vrot.slane %v453_v33, 6 }
 0x116   : > { %v389_v44 = vrot.slane %v384_v21, 7  ;;  %v392_v46 = vrot.slane %v385_v29, 6  ;;  %v483_v47 = vcombine.high %v995_v5, %v995_v5  ;;  %v484_v48 = vcombine.high %v978_v35, %v978_v35 }
 0x117   : > { %v485_v49 = vcombine.high %v453_v33, %v453_v33  ;;  %v330_v51 = vsel %vm329_vm2, %v328_v10, %v327_v1  ;;  %v441_v52 = vsel %vm331_vm3, %v439_v53, %v440_v40  ;;  %v465_v54 = vsel %vm334_vm4, %v464_v43, %v463_v42 }
 0x118   : > { %v390_v57 = vsel %vm329_vm2, %v389_v44, %v388_v39  ;;  %v487_v58 = vsel %vm324_vm0, %v483_v47, %v981_v50  ;;  %v332_v59 = vsel %vm331_vm3, %v328_v10, %v330_v51  ;;  %v466_v60 = vsel %vm336_vm5, %v464_v43, %v465_v54 }
 0x119   : > { %v391_v61 = vsel %vm331_vm3, %v389_v44, %v390_v57  ;;  %v488_v3 = vsel %vm326_vm1, %v483_v47, %v487_v58  ;;  %v489_v1 = vrot.slane %v484_v48, 7  ;;  %467 = vrot.lane.b32.xlu1 %v466_v60, %s777_s6  ;;  %v492_v6 = vrot.slane %v485_v49, 6 }
 0x11a   : > { %v393_v53 = vsel %vm334_vm4, %v392_v46, %v391_v61  ;;  %v335_v50 = vsel %vm334_vm4, %v333_v63, %v332_v59  ;;  %v442_v4 = vsel %vm334_vm4, %v434_v41, %v441_v52  ;;  %v375_v11 = vrot.slane %v970_v13, 1 }
 0x11b   : > { %v394_v10 = vsel %vm336_vm5, %v392_v46, %v393_v53  ;;  %v490_v7 = vsel %vm329_vm2, %v489_v1, %v488_v3  ;;  %v337_v8 = vsel %vm336_vm5, %v333_v63, %v335_v50  ;;  %v443_v2 = vsel %vm336_vm5, %v434_v41, %v442_v4 }
 0x11c   : > { %395 = vrot.lane.b32.xlu0 %v394_v10, %s777_s6  ;;  %v491_v12 = vsel %vm331_vm3, %v489_v1, %v490_v7  ;;  %340 = vst.msk [vmem:[%s1067_s8] sm:$0xf] %vm339_vm6, %v337_v8  ;;  %445 = vst.msk [vmem:[%s1067_s8 + $0x8] sm:$0xf] %vm339_vm6, %v443_v2  ;;  %v373_v13 = vsel %vm324_vm0, %v372_v62, %v371_v19  ;;  %v474_v56 = vsel %vm326_vm1, %v472_v14, %v473_v23 }
 0x11d   : > { %v493_v63 = vsel %vm334_vm4, %v492_v6, %v491_v12  ;;  %v374_v15 = vsel %vm326_vm1, %v372_v62, %v373_v13  ;;  %v476_v9 = vsel %vm329_vm2, %v475_v45, %v474_v56 }
 0x11e   : > { %v494_v16 = vsel %vm336_vm5, %v492_v6, %v493_v63  ;;  %v376_v19 = vsel %vm329_vm2, %v375_v11, %v374_v15  ;;  %v477_v5 = vsel %vm331_vm3, %v475_v45, %v476_v9 }
 0x11f   : > { %495 = vrot.lane.b32.xlu1 %v494_v16, %s777_s6  ;;  %v377_v55 = vsel %vm331_vm3, %v375_v11, %v376_v19  ;;  %v478_v62 = vsel %vm334_vm4, %v453_v33, %v477_v5 }
 0x120   : > { %v378_v14 = vsel %vm334_vm4, %v992_v0, %v377_v55  ;;  %v479_v17 = vsel %vm336_vm5, %v453_v33, %v478_v62 }
 0x121   : > { %v379_v20 = vsel %vm336_vm5, %v992_v0, %v378_v14  ;;  %481 = vst.msk [vmem:[%s1067_s8 + $0xc] sm:$0xf] %vm339_vm6, %v479_v17 }
 0x122   : > { %381 = vst.msk [vmem:[%s1067_s8 + $0x4] sm:$0xf] %vm339_vm6, %v379_v20 }
 0x187   : > { %v367_v35 = vpop.permute.xlu0 %366 }
 0x188   : > { %370 = vst.msk [vmem:[%s1067_s8] sm:$0xf] %vm369_vm7, %v367_v35 }
 0x18b   : > { %v468_v45 = vpop.permute.xlu1 %467 }
 0x18c   : > { %470 = vst.msk [vmem:[%s1067_s8 + $0x8] sm:$0xf] %vm369_vm7, %v468_v45 }
 0x18e   : > { %v396_v18 = vpop.permute.xlu0 %395 }
 0x18f   : > { %398 = vst.msk [vmem:[%s1067_s8 + $0x4] sm:$0xf] %vm369_vm7, %v396_v18 }
 0x191   : > { %v496_v0 = vpop.permute.xlu1 %495 }
 0x192   : > { %498 = vst.msk [vmem:[%s1067_s8 + $0xc] sm:$0xf] %vm369_vm7, %v496_v0 }
 0x193   : > { %728 = shalt.err (!%p725_p3)
}
 0x194   : > { %s729_s27 = scalar_lea.hbm %s1113_s22, 256  ;;  %s733_s30 = scalar_lea.hbm %s1153_s2, 512 }
 0x195   : > { %p730_p4 = scmp.ne.s32.totalorder %s1113_s22, %s729_s27  ;;  %p734_p9 = scmp.lt.s32.totalorder %s1113_s22, %s1153_s2 }
 0x196   : > { %p735_p10 = scmp.lt.s32.totalorder %s733_s30, %s729_s27 }
 0x197   : > { %p731_p7 = pnand %p730_p4, %p832_p5 }
 0x198   : > { %p736_p11 = por %p735_p10, %p734_p9 }
 0x199   : > { %p732_p8 = pneg %p731_p7 }
 0x19b   : > { %p737_p12 = pnand %p736_p11, %p732_p8 }
 0x19d   : > { %740 = shalt.err (!%p737_p12)
}
 0x19e   : > { %675 = dma.vmem_to_hbm [thread:$0]  (%p832_p5), %s515_s16, 256, %s1113_s22, %s500_s23  }
 0x19f PF: > { %p681_p13 = scmp.ge.s32.totalorder %s775_s12, 2  ;;  %s526_s5 = sand.u32 1, %s763_s9  }
 0x1a0   : > { %s527_s6 = scalar_lea.sflag [#allocation3], %s526_s5 }
 0x1a1   : > { %p678_p0 = pnand %p681_p13, %p836_p6 }
 0x1a3   : > { %p679_p1 = pneg %p678_p0 }
 0x1a5   : > { %758 = dma.done.wait (%p679_p1), %s527_s6, 256  }
 0x1a6   : > { %760 = vsyncadd (%p679_p1), %s527_s6, 4294967040  ;;  %p12_p2 = scmp.ge.s32.totalorder %s819_s15, 4   ;;  %s1156_s9 = smov %s767_s10 }
 0x1a7   : > { %s1157_s10 = smov %s771_s11  ;;  %s1158_s11 = smov %s830_s18 }
 0x1a8   : > { %s1159_s12 = smov %s819_s15  ;;  %14 = sbr.rel (!%p12_p2) target bundleno = 3 (0x3), region = 63 }
 0x1ad   :  { %532 = vsyncpa [#allocation3], 1 }
 0x1ae   :  { %534 = vsyncpa [#allocation3 + $0x1], 1 }

</bundles_post_ra>
